<compile_context>
chip_gen: v7x
topology: tpu7x:2x2x1
jax: 0.10.0
libtpu: 0.0.40
codegen_flags: <defaults>
</compile_context>

<pallas_src>
import functools
import math

import jax
import jax.numpy as jnp
import numpy as np
from jax.experimental import pallas as pl
from jax.experimental.pallas import tpu as pltpu


def _smoothing_kernel(x_ref, out_ref, acc_dy_ref, acc_dx_ref, acc_dz_ref,
                      carry_ref, *, d1, c, chunk_rows, use_carry,
                      has_dy, has_dx, has_dz):
    """Accumulates [sum dy^2, sum dx^2, sum dz^2] over the sequential grid.

    x_ref    : (BR, D2, D3*C) VMEM -- BR consecutive D1-slabs.
    out_ref  : (3,) SMEM f32       -- written once, at the last grid step.
    acc_*    : f32 VMEM accumulators (per (sublane, lane) partial sums).
    carry_ref: (D2, D3*C) f32 VMEM -- last slab of the previous chunk.
    """
    i = pl.program_id(0)
    br, d2, d3c = x_ref.shape
    n_chunks = br // chunk_rows

    @pl.when(i == 0)
    def _init():
        acc_dy_ref[...] = jnp.zeros_like(acc_dy_ref)
        acc_dx_ref[...] = jnp.zeros_like(acc_dx_ref)
        acc_dz_ref[...] = jnp.zeros_like(acc_dz_ref)
        if use_carry:
            carry_ref[...] = jnp.zeros_like(carry_ref)

    def chunk_body(t, loop_carry):
        if isinstance(t, int):
            start = t * chunk_rows
        else:
            start = pl.multiple_of(t * chunk_rows, chunk_rows)
        # Bounded f32 working set: one chunk of slabs at a time.
        x = x_ref[pl.ds(start, chunk_rows)].astype(jnp.float32)

        if has_dy:
            dy_part = None
            if chunk_rows > 1:
                # Interior dy: leading-axis shift -> pure elementwise vreg ops.
                # chunk_rows | D1 and chunks start at multiples of chunk_rows,
                # so interior pairs never cross a sample boundary (no mask).
                dy = x[1:] - x[:-1]
                dy_part = jnp.sum(dy * dy, axis=0)
            if use_carry:
                # Chunk-boundary dy against the carried previous slab; valid
                # only when the chunk does not start a new sample.
                g = i * br + start                  # global slab index
                valid = ((g % d1) != 0).astype(jnp.float32)
                dyb = x[0] - carry_ref[...]
                bterm = valid * (dyb * dyb)
                dy_part = bterm if dy_part is None else dy_part + bterm
                carry_ref[...] = x[chunk_rows - 1]
            if dy_part is not None:
                acc_dy_ref[...] += dy_part

        if has_dx:
            # dx: difference along D2 (sublane axis).
            dx = x[:, 1:, :] - x[:, :-1, :]
            acc_dx_ref[...] += jnp.sum(dx * dx, axis=0)

        if has_dz:
            # dz: shift by C within the flattened (D3*C) lane axis.
            dz = x[:, :, c:] - x[:, :, :-c]
            acc_dz_ref[...] += jnp.sum(dz * dz, axis=0)
        return loop_carry

    if n_chunks == 1:
        chunk_body(0, 0)
    else:
        jax.lax.fori_loop(0, n_chunks, chunk_body, 0)

    # Single XLU reduction + SMEM store per term for the whole kernel.
    @pl.when(i == pl.num_programs(0) - 1)
    def _finalize():
        out_ref[0] = jnp.sum(acc_dy_ref[...]) if has_dy else jnp.float32(0.0)
        out_ref[1] = jnp.sum(acc_dx_ref[...]) if has_dx else jnp.float32(0.0)
        out_ref[2] = jnp.sum(acc_dz_ref[...]) if has_dz else jnp.float32(0.0)


def smoothing_loss(y_pred, *, block_rows=None, chunk_rows=None,
                   block_budget_bytes=4 * 1024 * 1024,
                   chunk_budget_bytes=512 * 1024):
    """Pallas implementation of smooothing_loss.forward for y_pred [N,D1,D2,D3,C].

    block_budget_bytes: HBM->VMEM DMA block target (double-buffered by the
      pipeline).  4 MiB is safe on v5e/v6e/v7x scoped-VMEM defaults; on v6e
      (128 MiB physical VMEM) it can be raised to 8-16 MiB.
    chunk_budget_bytes: per-chunk f32 working set, bounding in-kernel
      temporaries independently of the DMA block size.
    """
    n, d1, d2, d3, c = y_pred.shape
    d3c = d3 * c
    nr = n * d1
    # Free, contiguous reshape (no HBM copy / padding):
    #   [N, D1, D2, D3, C] -> [N*D1, D2, D3*C]
    # TODO(synk): when D3*C < 128 (e.g. C=3 flow fields) every vreg row is only
    # partially filled (~2x loss); folding part of D2 into the lane axis would
    # recover it at the cost of extra dx/dz boundary masking.
    x = y_pred.reshape(nr, d2, d3c)

    itemsize = jnp.dtype(y_pred.dtype).itemsize
    slab_in = d2 * d3c * itemsize
    slab_f32 = d2 * d3c * 4

    # --- chunk_rows: divides D1 (and block_rows); bounds in-kernel temporaries.
    if chunk_rows is None:
        limit = d1 if block_rows is None else math.gcd(d1, block_rows)
        chunk_rows = 1
        for d in range(1, limit + 1):
            if limit % d == 0 and d * slab_f32 <= chunk_budget_bytes:
                chunk_rows = d
    if d1 % chunk_rows != 0:
        raise ValueError("chunk_rows must divide D1")

    # --- block_rows: multiple of chunk_rows that either divides D1 or is a
    # whole number of samples (k*D1 with k | N), sized to the DMA budget.
    if block_rows is None:
        block_rows = chunk_rows
        for d in range(chunk_rows, d1 + 1):
            if d1 % d == 0 and d % chunk_rows == 0 and d * slab_in <= block_budget_bytes:
                block_rows = d
        for k in range(1, n + 1):
            if n % k == 0 and k * d1 * slab_in <= block_budget_bytes:
                block_rows = max(block_rows, k * d1)
    if block_rows % chunk_rows != 0:
        raise ValueError("block_rows must be a multiple of chunk_rows")
    if not (d1 % block_rows == 0 or block_rows % d1 == 0):
        raise ValueError("block_rows must divide D1 or be a multiple of D1")
    if nr % block_rows != 0:
        raise ValueError("block_rows must divide N*D1")

    has_dy, has_dx, has_dz = d1 > 1, d2 > 1, d3 > 1
    use_carry = has_dy and chunk_rows < d1

    acc_dy_shape = (d2, d3c)
    acc_dx_shape = (max(d2 - 1, 1), d3c)
    acc_dz_shape = (d2, max(d3c - c, 1))

    grid = (nr // block_rows,)
    kernel = functools.partial(
        _smoothing_kernel, d1=d1, c=c, chunk_rows=chunk_rows,
        use_carry=use_carry, has_dy=has_dy, has_dx=has_dx, has_dz=has_dz)

    # Explicit scoped-VMEM limit: double-buffered input block + ~8x chunk f32
    # temporaries + accumulators, with headroom (>=32 MiB is safe everywhere;
    # v7x physical VMEM is 64 MiB).
    block_bytes = block_rows * slab_in
    acc_bytes = 4 * (int(np.prod(acc_dy_shape)) + int(np.prod(acc_dx_shape)) +
                     int(np.prod(acc_dz_shape)) + d2 * d3c)
    vmem_need = 2 * block_bytes + 8 * chunk_rows * slab_f32 + acc_bytes
    vmem_limit = int(max(2 * vmem_need + (4 << 20), 32 << 20))

    sums = pl.pallas_call(
        kernel,
        out_shape=jax.ShapeDtypeStruct((3,), jnp.float32),
        grid_spec=pltpu.PrefetchScalarGridSpec(
            num_scalar_prefetch=0,
            grid=grid,
            in_specs=[pl.BlockSpec((block_rows, d2, d3c), lambda i: (i, 0, 0))],
            out_specs=pl.BlockSpec(memory_space=pltpu.SMEM),
            scratch_shapes=[
                pltpu.VMEM(acc_dy_shape, jnp.float32),
                pltpu.VMEM(acc_dx_shape, jnp.float32),
                pltpu.VMEM(acc_dz_shape, jnp.float32),
                pltpu.VMEM((d2, d3c), jnp.float32),   # previous-slab carry
            ],
        ),
        # Sequential reduction grid (carried scratch accumulators).
        # TODO(synk): on v7x (2 TCs/chip) add a leading "parallel" grid axis of
        # size num_cores with per-core partial sums reduced in the wrapper.
        compiler_params=pltpu.CompilerParams(
            dimension_semantics=("arbitrary",),
            vmem_limit_bytes=vmem_limit),
    )(x)

    n_dy = n * (d1 - 1) * d2 * d3 * c
    n_dx = n * d1 * (d2 - 1) * d3 * c
    n_dz = n * d1 * d2 * (d3 - 1) * c
    # Note: the PyTorch reference returns NaN when a spatial dim is 1 (mean of
    # an empty tensor); degenerate terms are simply skipped here.
    d = jnp.float32(0.0)
    if n_dy > 0:
        d = d + sums[0] / n_dy
    if n_dx > 0:
        d = d + sums[1] / n_dx
    if n_dz > 0:
        d = d + sums[2] / n_dz
    return d / 2.0


def _reference(y):
    y = np.asarray(y, np.float64)
    dy = np.abs(y[:, 1:, :, :, :] - y[:, :-1, :, :, :])
    dx = np.abs(y[:, :, 1:, :, :] - y[:, :, :-1, :, :])
    dz = np.abs(y[:, :, :, 1:, :] - y[:, :, :, :-1, :])
    d = np.mean(dx * dx) + np.mean(dy * dy) + np.mean(dz * dz)
    return d / 2.0


if __name__ == "__main__":
    key = jax.random.PRNGKey(0)
    N, D1, D2, D3, C = 2, 8, 16, 16, 4
    y_pred = jax.random.uniform(key, (N, D1, D2, D3, C), dtype=jnp.float32)

    # Default tiling (multi-sample block, whole-sample chunks).
    out = jax.block_until_ready(smoothing_loss(y_pred))
    # Forced small tiling to exercise the chunk loop + carried-slab dy path.
    out_tiled = jax.block_until_ready(
        smoothing_loss(y_pred, block_rows=4, chunk_rows=2))

    ref = _reference(y_pred)
    np.testing.assert_allclose(np.asarray(out), ref, rtol=1e-4, atol=1e-6)
    np.testing.assert_allclose(np.asarray(out_tiled), ref, rtol=1e-4, atol=1e-6)

    print("KERNEL_OK")
</pallas_src>

<mosaic_0001>
module attributes {stable_mosaic.version = 11 : i64} {
  func.func @_smoothing_kernel(%arg0: i32, %arg1: memref<16x16x64xf32, #tpu.memory_space<vmem>>, %arg2: memref<3xf32, #tpu.memory_space<smem>>, %arg3: memref<16x64xf32, #tpu.memory_space<vmem>>, %arg4: memref<15x64xf32, #tpu.memory_space<vmem>>, %arg5: memref<16x60xf32, #tpu.memory_space<vmem>>, %arg6: memref<16x64xf32, #tpu.memory_space<vmem>>) attributes {dimension_semantics = [#tpu.dimension_semantics<arbitrary>], iteration_bounds = array<i64: 1>, scalar_prefetch = 0 : i64, scratch_operands = 4 : i64, tpu.core_type = #tpu.core_type<tc>, window_params = [{transform_indices = @transform_0, window_bounds = array<i64: 16, 16, 64>}, {transform_indices = @transform_1, window_bounds = array<i64: 3>}]} {
    %c0_i32 = arith.constant 0 : i32
    %0 = arith.cmpi eq, %arg0, %c0_i32 : i32
    %1 = arith.extui %0 : i1 to i32
    %c0_i32_0 = arith.constant 0 : i32
    %2 = arith.cmpi ne, %1, %c0_i32_0 : i32
    scf.if %2 {
      %cst = arith.constant 0.000000e+00 : f32
      %7 = vector.broadcast %cst : f32 to vector<16x64xf32>
      %c0 = arith.constant 0 : index
      %c0_5 = arith.constant 0 : index
      %8 = vector.load %arg3[%c0, %c0_5] : memref<16x64xf32, #tpu.memory_space<vmem>>, vector<16x64xf32>
      tpu.vector_store %arg3[%c0, %c0_5], %7 {strides = array<i32>} : memref<16x64xf32, #tpu.memory_space<vmem>>, vector<16x64xf32>,
      %cst_6 = arith.constant 0.000000e+00 : f32
      %9 = vector.broadcast %cst_6 : f32 to vector<15x64xf32>
      %c0_7 = arith.constant 0 : index
      %c0_8 = arith.constant 0 : index
      %10 = vector.load %arg4[%c0_7, %c0_8] : memref<15x64xf32, #tpu.memory_space<vmem>>, vector<15x64xf32>
      tpu.vector_store %arg4[%c0_7, %c0_8], %9 {strides = array<i32>} : memref<15x64xf32, #tpu.memory_space<vmem>>, vector<15x64xf32>,
      %cst_9 = arith.constant 0.000000e+00 : f32
      %11 = vector.broadcast %cst_9 : f32 to vector<16x60xf32>
      %c0_10 = arith.constant 0 : index
      %c0_11 = arith.constant 0 : index
      %12 = vector.load %arg5[%c0_10, %c0_11] : memref<16x60xf32, #tpu.memory_space<vmem>>, vector<16x60xf32>
      tpu.vector_store %arg5[%c0_10, %c0_11], %11 {strides = array<i32>} : memref<16x60xf32, #tpu.memory_space<vmem>>, vector<16x60xf32>,
    } else {
    }
    %c0_i32_1 = arith.constant 0 : i32
    %c2_i32 = arith.constant 2 : i32
    %3 = arith.addi %c0_i32_1, %c2_i32 : i32
    %c1_i32 = arith.constant 1 : i32
    scf.for %arg7 = %c0_i32_1 to %3 step %c1_i32  : i32 {
      %c8_i32 = arith.constant 8 : i32
      %7 = arith.muli %arg7, %c8_i32 : i32
      %8 = tpu.assume_multiple %7, 8 : i32
      %9 = arith.index_cast %8 : i32 to index
      %c0 = arith.constant 0 : index
      %c0_5 = arith.constant 0 : index
      %10 = vector.load %arg1[%9, %c0, %c0_5] : memref<16x16x64xf32, #tpu.memory_space<vmem>>, vector<8x16x64xf32>
      %11 = vector.extract_strided_slice %10 {offsets = [1, 0, 0], sizes = [7, 16, 64], strides = [1, 1, 1]} : vector<8x16x64xf32> to vector<7x16x64xf32>
      %12 = vector.extract_strided_slice %10 {offsets = [0, 0, 0], sizes = [7, 16, 64], strides = [1, 1, 1]} : vector<8x16x64xf32> to vector<7x16x64xf32>
      %13 = arith.subf %11, %12 : vector<7x16x64xf32>
      %14 = arith.mulf %13, %13 : vector<7x16x64xf32>
      %cst = arith.constant dense<0.000000e+00> : vector<16x64xf32>
      %15 = vector.multi_reduction <add>, %14, %cst [0] : vector<7x16x64xf32> to vector<16x64xf32>
      %c0_6 = arith.constant 0 : index
      %c0_7 = arith.constant 0 : index
      %16 = vector.load %arg3[%c0_6, %c0_7] : memref<16x64xf32, #tpu.memory_space<vmem>>, vector<16x64xf32>
      %17 = arith.addf %16, %15 : vector<16x64xf32>
      %c0_8 = arith.constant 0 : index
      %c0_9 = arith.constant 0 : index
      %18 = vector.load %arg3[%c0_8, %c0_9] : memref<16x64xf32, #tpu.memory_space<vmem>>, vector<16x64xf32>
      tpu.vector_store %arg3[%c0_8, %c0_9], %17 {strides = array<i32>} : memref<16x64xf32, #tpu.memory_space<vmem>>, vector<16x64xf32>,
      %19 = vector.extract_strided_slice %10 {offsets = [0, 1, 0], sizes = [8, 15, 64], strides = [1, 1, 1]} : vector<8x16x64xf32> to vector<8x15x64xf32>
      %20 = vector.extract_strided_slice %10 {offsets = [0, 0, 0], sizes = [8, 15, 64], strides = [1, 1, 1]} : vector<8x16x64xf32> to vector<8x15x64xf32>
      %21 = arith.subf %19, %20 : vector<8x15x64xf32>
      %c0_10 = arith.constant 0 : index
      %c0_11 = arith.constant 0 : index
      %22 = vector.load %arg4[%c0_10, %c0_11] : memref<15x64xf32, #tpu.memory_space<vmem>>, vector<15x64xf32>
      %23 = arith.mulf %21, %21 : vector<8x15x64xf32>
      %cst_12 = arith.constant dense<0.000000e+00> : vector<15x64xf32>
      %24 = vector.multi_reduction <add>, %23, %cst_12 [0] : vector<8x15x64xf32> to vector<15x64xf32>
      %25 = arith.addf %22, %24 : vector<15x64xf32>
      %c0_13 = arith.constant 0 : index
      %c0_14 = arith.constant 0 : index
      %26 = vector.load %arg4[%c0_13, %c0_14] : memref<15x64xf32, #tpu.memory_space<vmem>>, vector<15x64xf32>
      tpu.vector_store %arg4[%c0_13, %c0_14], %25 {strides = array<i32>} : memref<15x64xf32, #tpu.memory_space<vmem>>, vector<15x64xf32>,
      %27 = vector.extract_strided_slice %10 {offsets = [0, 0, 4], sizes = [8, 16, 60], strides = [1, 1, 1]} : vector<8x16x64xf32> to vector<8x16x60xf32>
      %28 = vector.extract_strided_slice %10 {offsets = [0, 0, 0], sizes = [8, 16, 60], strides = [1, 1, 1]} : vector<8x16x64xf32> to vector<8x16x60xf32>
      %29 = arith.subf %27, %28 : vector<8x16x60xf32>
      %c0_15 = arith.constant 0 : index
      %c0_16 = arith.constant 0 : index
      %30 = vector.load %arg5[%c0_15, %c0_16] : memref<16x60xf32, #tpu.memory_space<vmem>>, vector<16x60xf32>
      %31 = arith.mulf %29, %29 : vector<8x16x60xf32>
      %cst_17 = arith.constant dense<0.000000e+00> : vector<16x60xf32>
      %32 = vector.multi_reduction <add>, %31, %cst_17 [0] : vector<8x16x60xf32> to vector<16x60xf32>
      %33 = arith.addf %30, %32 : vector<16x60xf32>
      %c0_18 = arith.constant 0 : index
      %c0_19 = arith.constant 0 : index
      %34 = vector.load %arg5[%c0_18, %c0_19] : memref<16x60xf32, #tpu.memory_space<vmem>>, vector<16x60xf32>
      tpu.vector_store %arg5[%c0_18, %c0_19], %33 {strides = array<i32>} : memref<16x60xf32, #tpu.memory_space<vmem>>, vector<16x60xf32>,
    }
    %c2_i32_2 = arith.constant 2 : i32
    %c0_i32_3 = arith.constant 0 : i32
    %4 = arith.cmpi eq, %arg0, %c0_i32_3 : i32
    %5 = arith.extui %4 : i1 to i32
    %c0_i32_4 = arith.constant 0 : i32
    %6 = arith.cmpi ne, %5, %c0_i32_4 : i32
    scf.if %6 {
      %c0 = arith.constant 0 : index
      %c0_5 = arith.constant 0 : index
      %7 = vector.load %arg3[%c0, %c0_5] : memref<16x64xf32, #tpu.memory_space<vmem>>, vector<16x64xf32>
      %8 = vector.shape_cast %7 : vector<16x64xf32> to vector<1x16x64xf32>
      %cst = arith.constant dense<0.000000e+00> : vector<1xf32>
      %9 = vector.multi_reduction <add>, %8, %cst [1, 2] : vector<1x16x64xf32> to vector<1xf32>
      %10 = vector.shape_cast %9 : vector<1xf32> to vector<1x1x1xf32>
      %11 = vector.extract %10[0, 0, 0] : f32 from vector<1x1x1xf32>
      %c0_6 = arith.constant 0 : index
      %12 = memref.load %arg2[%c0_6] : memref<3xf32, #tpu.memory_space<smem>>
      memref.store %11, %arg2[%c0_6] : memref<3xf32, #tpu.memory_space<smem>>
      %c0_7 = arith.constant 0 : index
      %c0_8 = arith.constant 0 : index
      %13 = vector.load %arg4[%c0_7, %c0_8] : memref<15x64xf32, #tpu.memory_space<vmem>>, vector<15x64xf32>
      %14 = vector.shape_cast %13 : vector<15x64xf32> to vector<1x15x64xf32>
      %cst_9 = arith.constant dense<0.000000e+00> : vector<1xf32>
      %15 = vector.multi_reduction <add>, %14, %cst_9 [1, 2] : vector<1x15x64xf32> to vector<1xf32>
      %16 = vector.shape_cast %15 : vector<1xf32> to vector<1x1x1xf32>
      %17 = vector.extract %16[0, 0, 0] : f32 from vector<1x1x1xf32>
      %c1 = arith.constant 1 : index
      %18 = memref.load %arg2[%c1] : memref<3xf32, #tpu.memory_space<smem>>
      memref.store %17, %arg2[%c1] : memref<3xf32, #tpu.memory_space<smem>>
      %c0_10 = arith.constant 0 : index
      %c0_11 = arith.constant 0 : index
      %19 = vector.load %arg5[%c0_10, %c0_11] : memref<16x60xf32, #tpu.memory_space<vmem>>, vector<16x60xf32>
      %20 = vector.shape_cast %19 : vector<16x60xf32> to vector<1x16x60xf32>
      %cst_12 = arith.constant dense<0.000000e+00> : vector<1xf32>
      %21 = vector.multi_reduction <add>, %20, %cst_12 [1, 2] : vector<1x16x60xf32> to vector<1xf32>
      %22 = vector.shape_cast %21 : vector<1xf32> to vector<1x1x1xf32>
      %23 = vector.extract %22[0, 0, 0] : f32 from vector<1x1x1xf32>
      %c2 = arith.constant 2 : index
      %24 = memref.load %arg2[%c2] : memref<3xf32, #tpu.memory_space<smem>>
      memref.store %23, %arg2[%c2] : memref<3xf32, #tpu.memory_space<smem>>
    } else {
    }
    return
  }
  func.func @transform_0(%arg0: i32) -> (i32, i32, i32) {
    %c0_i32 = arith.constant 0 : i32
    %c0_i32_0 = arith.constant 0 : i32
    %c0_i32_1 = arith.constant 0 : i32
    return %arg0, %c0_i32, %c0_i32_0 : i32, i32, i32
  }
  func.func @transform_1(%arg0: i32) -> i32 {
    %c0_i32 = arith.constant 0 : i32
    %c0_i32_0 = arith.constant 0 : i32
    return %c0_i32 : i32
  }
}

</mosaic_0001>

<bundles_post_ra>
// kernel: tpu_custom_call.1
= control target key start
LH: loop header
LB: loop body
LE: loop exit
PB: predicated region body
PF: predicated region fallthrough
CT: control target
= control target key end

     0   :  { %6 = vsyncpa [#allocation7], 0  ;;  %s806_s0 = inlined_call_operand.hbm [shape: f32[16,16,64], index: 0, kind: input, shape index: {}]   ;;  %s807_s1 = inlined_call_operand.hbm [shape: f32[3], index: 1, kind: output, shape index: {}]  }
   0x1   :  { %7 = vsyncpa [#allocation8], 0  ;;  %s526_s6 = smov [#allocation6]   ;;  %s482_s10 = scalar_lea.hbm %s806_s0, 4096 }
   0x2   :  { %s13_s7 = sshll.u32 %s526_s6, 4  ;;  %p483_p0 = scmp.ne.s32.totalorder %s806_s0, %s482_s10  ;;  %s14_s7 = int_to_ptr.vmem [resolvable:$true] %s13_s7 }
   0x3   :  { %p486_p1 = scmp.lt.u32.totalorder %s482_s10, %s806_s0 }
   0x5   :  { %p488_p2 = pnand %p486_p1, %p483_p0 }
   0x7   :  { %491 = shalt.err (!%p488_p2)
}
   0x8   :  { %s492_s15 = scalar_lea.vmem %s14_s7, 4096  ;;  %p497_p4 = scmp.lt.s32.totalorder %s14_s7, %s14_s7 }
   0x9   :  { %p493_p3 = scmp.ne.s32.totalorder %s14_s7, %s492_s15  ;;  %p498_p5 = scmp.lt.s32.totalorder %s492_s15, %s492_s15 }
   0xb   :  { %p499_p6 = por %p498_p5, %p497_p4 }
   0xd   :  { %p500_p7 = pnand %p499_p6, %p493_p3 }
   0xf   :  { %503 = shalt.err (!%p500_p7)
}
  0x10   :  { %s527_s16 = smov 128   ;;  %s528_s17 = smov 8  }
  0x11   :  { %19 = dma.hbm_to_vmem [thread:$0]  %s806_s0, 4096, %s14_s7, [#allocation7], %s527_s16, %s527_s16, %s528_s17  }
  0x12   :  { %518 = dma.done.wait [#allocation7], 4096  }
  0x13   :  { %519 = vsyncadd [#allocation7], 4294963200  ;;  %vm27_vm0 = vcmask 523264   ;;  %vm31_vm1 = vcmask 522240   ;;  %vm33_vm2 = vcmask 490496   ;;  %v529_v0 = vmov 0.0  }
  0x14   :  { %28 = vst.msk [vmem:[#allocation2] sm:$0xff] %vm27_vm0, %v529_v0  ;;  %29 = vst.msk [vmem:[#allocation2 + $0x8] sm:$0xff] %vm27_vm0, %v529_v0  ;;  %s561_s20 = smov 0  }
  0x15   :  { %30 = vst.msk [vmem:[#allocation3] sm:$0xff] %vm27_vm0, %v529_v0 }
  0x16   :  { %32 = vst.msk [vmem:[#allocation3 + $0x8] sm:$0x7f] %vm31_vm1, %v529_v0 }
  0x17   :  { %34 = vst.msk [vmem:[#allocation4] sm:$0xff] %vm33_vm2, %v529_v0  ;;  %35 = vst.msk [vmem:[#allocation4 + $0x8] sm:$0xff] %vm33_vm2, %v529_v0 }
  0x18 LB: > { %s460_s0 = sshll.u32 %s524_s20, 7  ;;  %vm138_vm3 = vcmask 1040384   ;;  %s530_s22 = smov 4   ;;  %vm213_vm4 = vcmask 523265   ;;  %vm246_vm5 = vcmask 1046528   ;;  %vm339_vm6 = vcmask 523296   ;;  %s524_s20 = sphi %s561_s20, %s41_s20  }
  0x19   : > { %s567_s21 = scalar_lea.vmem [#allocation6], %s460_s0  ;;  %s531_s23 = smov 124  }
  0x1a   : > { %v570_v1 = vld [vmem:[%s567_s21 + $0x10] sm:$0xff]  ;;  %v573_v2 = vld [vmem:[%s567_s21] sm:$0xff]  ;;  %v576_v3 = vld [vmem:[%s567_s21 + $0x18] sm:$0xff]  ;;  %s41_s20 = sadd.s32 1, %s524_s20  }
  0x1b   : > { %261 = vrot.lane.b32.xlu1 %v570_v1, %s530_s22  ;;  %v142_v4 = vrot.slane %v570_v1, 7  ;;  %257 = vrot.lane.b32.xlu0 %v573_v2, %s530_s22  ;;  %v61_v5 = vsub.f32 %v570_v1, %v573_v2  ;;  %v139_v6 = vrot.slane %v573_v2, 7  ;;  %v143_v7 = vrot.slane %v576_v3, 7  ;;  %v588_v8 = vld [vmem:[%s567_s21 + $0x8] sm:$0xff]  ;;  %v610_v25 = vld [vmem:[%s567_s21 + $0x20] sm:$0xff]  ;;  %p38_p8 = scmp.ge.s32.totalorder %s41_s20, 2  }
  0x1c   : > { %v591_v9 = vld [vmem:[%s567_s21 + $0x28] sm:$0xff]  ;;  %v62_v10 = vsub.f32 %v576_v3, %v588_v8  ;;  %v140_v11 = vrot.slane %v588_v8, 7  ;;  %v63_v29 = vsub.f32 %v610_v25, %v570_v1  ;;  %v145_v37 = vrot.slane %v610_v25, 7  ;;  %v622_v38 = vld [vmem:[%s567_s21 + $0x38] sm:$0xff]  ;;  %v625_v39 = vld [vmem:[%s567_s21 + $0x30] sm:$0xff]  ;;  %s504_s29 = scalar_lea.hbm (%p38_p8), %s807_s1, 16 }
  0x1d   : > { %v64_v12 = vsub.f32 %v591_v9, %v576_v3  ;;  %v181_v13 = vsub.f32 %v570_v1, %v142_v4  ;;  %v75_v14 = vmul.f32 %v61_v5, %v61_v5  ;;  %v179_v15 = vsub.f32 %v573_v2, %v139_v6  ;;  %v642_v52 = vld [vmem:[%s567_s21 + $0x48] sm:$0xff]  ;;  %v648_v57 = vld [vmem:[%s567_s21 + $0x40] sm:$0xff]  ;;  %p505_p9 = scmp.ne.s32.totalorder (%p38_p8), %s807_s1, %s504_s29  ;;  %p508_p10 = scmp.lt.u32.totalorder (%p38_p8), %s504_s29, %s807_s1 }
  0x1e   : > { %v144_v16 = vsel %vm138_vm3, %v142_v4, %v143_v7  ;;  %v76_v17 = vmul.f32 %v62_v10, %v62_v10  ;;  %v141_v19 = vsel %vm138_vm3, %v139_v6, %v140_v11  ;;  %v146_v24 = vrot.slane %v591_v9, 7 }
  0x1f   : > { %v182_v18 = vsub.f32 %v576_v3, %v144_v16  ;;  %v78_v20 = vmul.f32 %v64_v12, %v64_v12  ;;  %v199_v21 = vmul.f32 %v181_v13, %v181_v13  ;;  %v197_v22 = vmul.f32 %v179_v15, %v179_v15  ;;  %263 = vrot.lane.b32.xlu1 %v576_v3, %s530_s22  ;;  %v665_v15 = vld [vmem:[%s567_s21 + $0x58] sm:$0xff]  ;;  %p510_p11 = pnand (%p38_p8), %p508_p10, %p505_p9 }
  0x20   : > { %259 = vrot.lane.b32.xlu0 %v588_v8, %s530_s22  ;;  %v180_v23 = vsub.f32 %v588_v8, %v141_v19  ;;  %v103_v26 = vsel %vm27_vm0, %v76_v17, 0.0  ;;  %v90_v31 = vsel %vm27_vm0, %v75_v14, 0.0  ;;  %v77_v36 = vmul.f32 %v63_v29, %v63_v29 }
  0x21   : > { %v200_v27 = vmul.f32 %v182_v18, %v182_v18  ;;  %v104_v28 = vsel %vm27_vm0, %v78_v20, 0.0  ;;  %v215_v30 = vsel %vm213_vm4, %v199_v21, 0.0  ;;  %v214_v32 = vsel %vm213_vm4, %v197_v22, 0.0  ;;  %v675_v20 = vld [vmem:[%s567_s21 + $0x50] sm:$0xff] }
  0x22   : > { %v198_v33 = vmul.f32 %v180_v23, %v180_v23  ;;  %v105_v35 = vadd.f32 %v104_v28, %v103_v26  ;;  %v216_v40 = vadd.f32 %v215_v30, %v214_v32  ;;  %v66_v42 = vsub.f32 %v622_v38, %v591_v9 }
  0x23   : > { %v230_v34 = vsel %vm27_vm0, %v200_v27, 0.0  ;;  %267 = vrot.lane.b32.xlu1 %v591_v9, %s530_s22  ;;  %v65_v43 = vsub.f32 %v625_v39, %v610_v25  ;;  %v91_v44 = vsel %vm27_vm0, %v77_v36, 0.0  ;;  %v147_v45 = vsel %vm138_vm3, %v145_v37, %v146_v24 }
  0x24   : > { %v229_v41 = vsel %vm27_vm0, %v198_v33, 0.0  ;;  %265 = vrot.lane.b32.xlu0 %v610_v25, %s530_s22  ;;  %v183_v46 = vsub.f32 %v610_v25, %v145_v37  ;;  %v149_v47 = vrot.slane %v622_v38, 7  ;;  %v184_v49 = vsub.f32 %v591_v9, %v147_v45  ;;  %v699_v45 = vld [vmem:[%s567_s21 + $0x60] sm:$0xff] }
  0x25   : > { %v231_v48 = vadd.f32 %v230_v34, %v229_v41  ;;  %v80_v50 = vmul.f32 %v66_v42, %v66_v42  ;;  %v79_v51 = vmul.f32 %v65_v43, %v65_v43  ;;  %v92_v54 = vadd.f32 %v91_v44, %v90_v31 }
  0x26   : > { %v201_v53 = vmul.f32 %v183_v46, %v183_v46  ;;  %v148_v55 = vrot.slane %v625_v39, 7  ;;  %v68_v56 = vsub.f32 %v642_v52, %v622_v38  ;;  %v202_v58 = vmul.f32 %v184_v49, %v184_v49 }
  0x27   : > { %v106_v59 = vsel %vm27_vm0, %v80_v50, 0.0  ;;  %271 = vrot.lane.b32.xlu1 %v622_v38, %s530_s22  ;;  %v152_v60 = vrot.slane %v642_v52, 7  ;;  %v67_v61 = vsub.f32 %v648_v57, %v625_v39  ;;  %v93_v63 = vsel %vm27_vm0, %v79_v51, 0.0 }
  0x28   : > { %269 = vrot.lane.b32.xlu0 %v625_v39, %s530_s22  ;;  %v217_v62 = vsel %vm213_vm4, %v201_v53, 0.0  ;;  %v150_v0 = vsel %vm138_vm3, %v148_v55, %v149_v47  ;;  %v185_v4 = vsub.f32 %v625_v39, %v148_v55  ;;  %v232_v5 = vsel %vm27_vm0, %v202_v58, 0.0 }
  0x29   : > { %v218_v6 = vadd.f32 %v217_v62, %v216_v40  ;;  %v107_v7 = vadd.f32 %v106_v59, %v105_v35  ;;  %v186_v10 = vsub.f32 %v622_v38, %v150_v0  ;;  %v233_v11 = vadd.f32 %v232_v5, %v231_v48  ;;  %v693_v40 = vld [vmem:[%s567_s21 + $0x68] sm:$0xff] }
  0x2a   : > { %v203_v12 = vmul.f32 %v185_v4, %v185_v4  ;;  %v82_v13 = vmul.f32 %v68_v56, %v68_v56  ;;  %v81_v14 = vmul.f32 %v67_v61, %v67_v61  ;;  %v94_v17 = vadd.f32 %v93_v63, %v92_v54  ;;  %v723_v4 = vld [vmem:[%s567_s21 + $0x70] sm:$0xff] }
  0x2b   : > { %v204_v16 = vmul.f32 %v186_v10, %v186_v10  ;;  %275 = vrot.lane.b32.xlu1 %v642_v52, %s530_s22  ;;  %v151_v18 = vrot.slane %v648_v57, 7  ;;  %v70_v19 = vsub.f32 %v665_v15, %v642_v52  ;;  %v69_v24 = vsub.f32 %v675_v20, %v648_v57 }
  0x2c   : > { %273 = vrot.lane.b32.xlu0 %v648_v57, %s530_s22  ;;  %v219_v21 = vsel %vm213_vm4, %v203_v12, 0.0  ;;  %v108_v22 = vsel %vm27_vm0, %v82_v13, 0.0  ;;  %v95_v23 = vsel %vm27_vm0, %v81_v14, 0.0  ;;  %v155_v29 = vrot.slane %v665_v15, 7 }
  0x2d   : > { %v234_v26 = vsel %vm27_vm0, %v204_v16, 0.0  ;;  %v220_v27 = vadd.f32 %v219_v21, %v218_v6  ;;  %v153_v28 = vsel %vm138_vm3, %v151_v18, %v152_v60  ;;  %v109_v31 = vadd.f32 %v108_v22, %v107_v7  ;;  %v716_v60 = vld [vmem:[%s567_s21 + $0x78] sm:$0xff] }
  0x2e   : > { %v235_v30 = vadd.f32 %v234_v26, %v233_v11  ;;  %v187_v32 = vsub.f32 %v648_v57, %v151_v18  ;;  %v188_v33 = vsub.f32 %v642_v52, %v153_v28  ;;  %v96_v34 = vadd.f32 %v95_v23, %v94_v17  ;;  %v117_v26 = vld [vmem:[#allocation2 + $0x8] sm:$0xff] }
  0x2f   : > { %v84_v35 = vmul.f32 %v70_v19, %v70_v19  ;;  %279 = vrot.lane.b32.xlu1 %v665_v15, %s530_s22  ;;  %v83_v36 = vmul.f32 %v69_v24, %v69_v24  ;;  %v154_v37 = vrot.slane %v675_v20, 7  ;;  %v72_v43 = vsub.f32 %v693_v40, %v665_v15 }
  0x30   : > { %277 = vrot.lane.b32.xlu0 %v675_v20, %s530_s22  ;;  %v205_v41 = vmul.f32 %v187_v32, %v187_v32  ;;  %v206_v42 = vmul.f32 %v188_v33, %v188_v33  ;;  %v158_v44 = vrot.slane %v693_v40, 7  ;;  %v71_v49 = vsub.f32 %v699_v45, %v675_v20 }
  0x31   : > { %v110_v46 = vsel %vm27_vm0, %v84_v35, 0.0  ;;  %v156_v47 = vsel %vm138_vm3, %v154_v37, %v155_v29  ;;  %v189_v48 = vsub.f32 %v675_v20, %v154_v37  ;;  %v157_v54 = vrot.slane %v699_v45, 7 }
  0x32   : > { %v221_v50 = vsel %vm213_vm4, %v205_v41, 0.0  ;;  %v236_v51 = vsel %vm27_vm0, %v206_v42, 0.0  ;;  %v190_v53 = vsub.f32 %v665_v15, %v156_v47  ;;  %v97_v58 = vsel %vm27_vm0, %v83_v36, 0.0  ;;  %v116_v47 = vld [vmem:[#allocation2] sm:$0xff] }
  0x33   : > { %v222_v55 = vadd.f32 %v221_v50, %v220_v27  ;;  %v237_v56 = vadd.f32 %v236_v51, %v235_v30  ;;  %v207_v59 = vmul.f32 %v189_v48, %v189_v48  ;;  %283 = vrot.lane.b32.xlu1 %v693_v40, %s530_s22  ;;  %v159_v62 = vsel %vm138_vm3, %v157_v54, %v158_v44 }
  0x34   : > { %281 = vrot.lane.b32.xlu0 %v699_v45, %s530_s22  ;;  %v208_v61 = vmul.f32 %v190_v53, %v190_v53  ;;  %v191_v63 = vsub.f32 %v699_v45, %v157_v54  ;;  %v74_v0 = vsub.f32 %v716_v60, %v693_v40  ;;  %v192_v5 = vsub.f32 %v693_v40, %v159_v62 }
  0x35   : > { %v86_v6 = vmul.f32 %v72_v43, %v72_v43  ;;  %v161_v7 = vrot.slane %v716_v60, 7  ;;  %v111_v10 = vadd.f32 %v110_v46, %v109_v31  ;;  %v223_v11 = vsel %vm213_vm4, %v207_v59, 0.0 }
  0x36   : > { %v209_v12 = vmul.f32 %v191_v63, %v191_v63  ;;  %v88_v13 = vmul.f32 %v74_v0, %v74_v0  ;;  %v73_v14 = vsub.f32 %v723_v4, %v699_v45  ;;  %v85_v17 = vmul.f32 %v71_v49, %v71_v49 }
  0x37   : > { %v112_v16 = vsel %vm27_vm0, %v86_v6, 0.0  ;;  %287 = vrot.lane.b32.xlu1 %v716_v60, %s530_s22  ;;  %v160_v18 = vrot.slane %v723_v4, 7  ;;  %v210_v19 = vmul.f32 %v192_v5, %v192_v5  ;;  %v238_v21 = vsel %vm27_vm0, %v208_v61, 0.0 }
  0x38   : > { %285 = vrot.lane.b32.xlu0 %v723_v4, %s530_s22  ;;  %v114_v22 = vsel %vm27_vm0, %v88_v13, 0.0  ;;  %v113_v23 = vadd.f32 %v112_v16, %v111_v10  ;;  %v87_v24 = vmul.f32 %v73_v14, %v73_v14  ;;  %v99_v27 = vsel %vm27_vm0, %v85_v17, 0.0 }
  0x39   : > { %v162_v28 = vsel %vm138_vm3, %v160_v18, %v161_v7  ;;  %v193_v29 = vsub.f32 %v723_v4, %v160_v18  ;;  %v225_v30 = vsel %vm213_vm4, %v209_v12, 0.0  ;;  %v240_v33 = vsel %vm27_vm0, %v210_v19, 0.0 }
  0x3a   : > { %v115_v31 = vadd.f32 %v114_v22, %v113_v23  ;;  %v194_v32 = vsub.f32 %v716_v60, %v162_v28  ;;  %v98_v35 = vadd.f32 %v97_v58, %v96_v34  ;;  %v101_v36 = vsel %vm27_vm0, %v87_v24, 0.0  ;;  %v196_v58 = vld [vmem:[#allocation3 + $0x8] sm:$0x7f] }
  0x3b   : > { %v211_v37 = vmul.f32 %v193_v29, %v193_v29  ;;  %v224_v41 = vadd.f32 %v223_v11, %v222_v55  ;;  %v239_v42 = vadd.f32 %v238_v21, %v237_v56  ;;  %v195_v55 = vld [vmem:[#allocation3] sm:$0xff] }
  0x3c   : > { %v119_v43 = vadd.f32 %v117_v26, %v115_v31  ;;  %v212_v44 = vmul.f32 %v194_v32, %v194_v32  ;;  %v100_v46 = vadd.f32 %v99_v27, %v98_v35 }
  0x3d   : > { %v227_v48 = vsel %vm213_vm4, %v211_v37, 0.0  ;;  %v226_v49 = vadd.f32 %v225_v30, %v224_v41  ;;  %v241_v50 = vadd.f32 %v240_v33, %v239_v42 }
  0x3e   : > { %121 = vst.msk [vmem:[#allocation2 + $0x8] sm:$0xff] %vm27_vm0, %v119_v43  ;;  %v242_v51 = vsel %vm27_vm0, %v212_v44, 0.0  ;;  %v102_v53 = vadd.f32 %v101_v36, %v100_v46 }
  0x3f   : > { %v228_v54 = vadd.f32 %v227_v48, %v226_v49  ;;  %v243_v34 = vadd.f32 %v242_v51, %v241_v50 }
  0x40   : > { %v118_v59 = vadd.f32 %v116_v47, %v102_v53 }
  0x41   : > { %v247_v56 = vrot.slane %v228_v54, 1  ;;  %v248_v61 = vrot.slane %v243_v34, 1 }
  0x42   : > { %120 = vst.msk [vmem:[#allocation2] sm:$0xff] %vm27_vm0, %v118_v59 }
  0x43   : > { %v249_v62 = vsel %vm246_vm5, %v247_v56, %v248_v61  ;;  %v253_v63 = vadd.f32 %v248_v61, %v196_v58 }
  0x44   : > { %v252_v0 = vadd.f32 %v249_v62, %v195_v55 }
  0x45   : > { %256 = vst.msk [vmem:[#allocation3 + $0x8] sm:$0x7f] %vm31_vm1, %v253_v63 }
  0x46   : > { %254 = vst.msk [vmem:[#allocation3] sm:$0xff] %vm27_vm0, %v252_v0 }
  0x8d   : > { %v262_v5 = vpop.permute.xlu1 %261  ;;  %v258_v6 = vpop.permute.xlu0 %257 }
  0x8e   : > { %v307_v13 = vsub.f32 %v570_v1, %v262_v5  ;;  %v305_v14 = vsub.f32 %v573_v2, %v258_v6 }
  0x90   : > { %v325_v23 = vmul.f32 %v307_v13, %v307_v13  ;;  %v323_v24 = vmul.f32 %v305_v14, %v305_v14 }
  0x91   : > { %v264_v7 = vpop.permute.xlu1 %263 }
  0x92   : > { %v260_v10 = vpop.permute.xlu0 %259  ;;  %v308_v16 = vsub.f32 %v576_v3, %v264_v7  ;;  %v340_v31 = vsel %vm339_vm6, %v323_v24, 0.0 }
  0x93   : > { %v306_v17 = vsub.f32 %v588_v8, %v260_v10 }
  0x94   : > { %v326_v26 = vmul.f32 %v308_v16, %v308_v16 }
  0x95   : > { %v268_v11 = vpop.permute.xlu1 %267  ;;  %v324_v27 = vmul.f32 %v306_v17, %v306_v17 }
  0x96   : > { %v266_v12 = vpop.permute.xlu0 %265  ;;  %v310_v18 = vsub.f32 %v591_v9, %v268_v11  ;;  %v356_v32 = vsel %vm339_vm6, %v326_v26, 0.0  ;;  %v322_v26 = vld [vmem:[#allocation4 + $0x8] sm:$0xff] }
  0x97   : > { %v309_v19 = vsub.f32 %v610_v25, %v266_v12  ;;  %v341_v25 = vsel %vm339_vm6, %v325_v23, 0.0  ;;  %v355_v33 = vsel %vm339_vm6, %v324_v27, 0.0  ;;  %v321_v27 = vld [vmem:[#allocation4] sm:$0xff] }
  0x98   : > { %v328_v2 = vmul.f32 %v310_v18, %v310_v18  ;;  %v342_v44 = vadd.f32 %v341_v25, %v340_v31  ;;  %v357_v46 = vadd.f32 %v356_v32, %v355_v33  ;;  %v403_v31 = vld [vmem:[#allocation3] sm:$0xff] (%p38_p8) }
  0x99   : > { %v272_v21 = vpop.permute.xlu1 %271  ;;  %v327_v29 = vmul.f32 %v309_v19, %v309_v19 }
  0x9a   : > { %v270_v22 = vpop.permute.xlu0 %269  ;;  %v312_v28 = vsub.f32 %v622_v38, %v272_v21 }
  0x9b   : > { %v311_v1 = vsub.f32 %v625_v39, %v270_v22  ;;  %v358_v39 = vsel %vm339_vm6, %v328_v2, 0.0  ;;  %v343_v36 = vsel %vm339_vm6, %v327_v29, 0.0 }
  0x9c   : > { %v330_v35 = vmul.f32 %v312_v28, %v312_v28  ;;  %v359_v51 = vadd.f32 %v358_v39, %v357_v46  ;;  %v344_v53 = vadd.f32 %v343_v36, %v342_v44 }
  0x9d   : > { %v276_v3 = vpop.permute.xlu1 %275  ;;  %v329_v38 = vmul.f32 %v311_v1, %v311_v1 }
  0x9e   : > { %v274_v30 = vpop.permute.xlu0 %273  ;;  %v314_v8 = vsub.f32 %v642_v52, %v276_v3  ;;  %v360_v47 = vsel %vm339_vm6, %v330_v35, 0.0  ;;  %v386_v3 = vld [vmem:[#allocation2] sm:$0xff] (%p38_p8)  ;;  %v404_v35 = vld [vmem:[#allocation3 + $0x8] sm:$0x7f] (%p38_p8) }
  0x9f   : > { %v313_v9 = vsub.f32 %v648_v57, %v274_v30  ;;  %v345_v48 = vsel %vm339_vm6, %v329_v38, 0.0  ;;  %v361_v55 = vadd.f32 %v360_v47, %v359_v51  ;;  %v389_v25 = vsel (%p38_p8), %vm27_vm0, %v386_v3, 0.0 }
  0xa0   : > { %v332_v42 = vmul.f32 %v314_v8, %v314_v8  ;;  %v346_v56 = vadd.f32 %v345_v48, %v344_v53  ;;  %v405_v38 = vsel (%p38_p8), %vm27_vm0, %v403_v31, 0.0  ;;  %v407_v36 = vsel (%p38_p8), %vm31_vm1, %v404_v35, 0.0 }
  0xa1   : > { %v280_v37 = vpop.permute.xlu1 %279  ;;  %v331_v52 = vmul.f32 %v313_v9, %v313_v9  ;;  %v387_v9 = vld [vmem:[#allocation2 + $0x8] sm:$0xff] (%p38_p8) }
  0xa2   : > { %v278_v41 = vpop.permute.xlu0 %277  ;;  %v316_v57 = vsub.f32 %v665_v15, %v280_v37  ;;  %v362_v58 = vsel %vm339_vm6, %v332_v42, 0.0  ;;  %v390_v33 = vsel (%p38_p8), %vm27_vm0, %v387_v9, 0.0  ;;  %v408_v37 = vadd.f32 (%p38_p8), %v407_v36, %v405_v38 }
  0xa3   : > { %v315_v43 = vsub.f32 %v675_v20, %v278_v41  ;;  %v347_v59 = vsel %vm339_vm6, %v331_v52, 0.0  ;;  %v363_v5 = vadd.f32 %v362_v58, %v361_v55  ;;  %v391_v39 = vadd.f32 (%p38_p8), %v390_v33, %v389_v25 }
  0xa4   : > { %v334_v49 = vmul.f32 %v316_v57, %v316_v57  ;;  %v348_v6 = vadd.f32 %v347_v59, %v346_v56 }
  0xa5   : > { %v333_v50 = vmul.f32 %v315_v43, %v315_v43  ;;  %v284_v54 = vpop.permute.xlu1 %283 }
  0xa6   : > { %v282_v34 = vpop.permute.xlu0 %281  ;;  %v318_v15 = vsub.f32 %v693_v40, %v284_v54  ;;  %v364_v61 = vsel %vm339_vm6, %v334_v49, 0.0 }
  0xa7   : > { %v317_v20 = vsub.f32 %v699_v45, %v282_v34  ;;  %v349_v62 = vsel %vm339_vm6, %v333_v50, 0.0  ;;  %v365_v13 = vadd.f32 %v364_v61, %v363_v5 }
  0xa8   : > { %v336_v63 = vmul.f32 %v318_v15, %v318_v15  ;;  %v350_v14 = vadd.f32 %v349_v62, %v348_v6 }
  0xa9   : > { %v335_v0 = vmul.f32 %v317_v20, %v317_v20  ;;  %v288_v7 = vpop.permute.xlu1 %287 }
  0xaa   : > { %v286_v10 = vpop.permute.xlu0 %285  ;;  %v366_v11 = vsel %vm339_vm6, %v336_v63, 0.0  ;;  %v320_v40 = vsub.f32 %v716_v60, %v288_v7 }
  0xab   : > { %v351_v12 = vsel %vm339_vm6, %v335_v0, 0.0  ;;  %v319_v45 = vsub.f32 %v723_v4, %v286_v10  ;;  %v367_v18 = vadd.f32 %v366_v11, %v365_v13 }
  0xac   : > { %v338_v16 = vmul.f32 %v320_v40, %v320_v40  ;;  %v352_v19 = vadd.f32 %v351_v12, %v350_v14 }
  0xad   : > { %v337_v17 = vmul.f32 %v319_v45, %v319_v45 }
  0xae   : > { %v368_v21 = vsel %vm339_vm6, %v338_v16, 0.0 }
  0xaf   : > { %v353_v22 = vsel %vm339_vm6, %v337_v17, 0.0  ;;  %v369_v23 = vadd.f32 %v368_v21, %v367_v18 }
  0xb0   : > { %v354_v24 = vadd.f32 %v353_v22, %v352_v19 }
  0xb1   : > { %374 = vrot.lane.b32.xlu1 %v369_v23, %s531_s23 }
  0xb2   : > { %372 = vrot.lane.b32.xlu0 %v354_v24, %s531_s23 }
  0xd1   :  { %392 = vadd.xlane.f32.xlu0 (%p38_p8), %v391_v39 }
  0xd5   :  { %409 = vadd.xlane.f32.xlu0 (%p38_p8), %v408_v37 }
 0x121   :  { %40 = sbr.rel (!%p38_p8) target bundleno = 24 (0x18), region = 47 }
 0x123   : > { %v375_v60 = vpop.permute.xlu1 %374 }
 0x124   : > { %v373_v28 = vpop.permute.xlu0 %372  ;;  %v379_v4 = vadd.f32 %v375_v60, %v322_v26 }
 0x125   : > { %v378_v1 = vadd.f32 %v373_v28, %v321_v27 }
 0x126   : > { %382 = vst.msk [vmem:[#allocation4 + $0x8] sm:$0xff] %vm33_vm2, %v379_v4 }
 0x127   : > { %381 = vst.msk [vmem:[#allocation4] sm:$0xff] %vm33_vm2, %v378_v1 }
 0x12d   :  { %v421_v29 = vld [vmem:[#allocation4 + $0x8] sm:$0xff] }
 0x12e   :  { %v420_v2 = vld [vmem:[#allocation4] sm:$0xff]  ;;  %v424_v8 = vsel %vm33_vm2, %v421_v29, 0.0 }
 0x12f   :  { %v423_v30 = vsel %vm33_vm2, %v420_v2, 0.0 }
 0x130   :  { %v425_v32 = vadd.f32 %v424_v8, %v423_v30 }
 0x132   :  { %426 = vadd.xlane.f32.xlu1 %v425_v32 }
 0x15e   :  { %v393_v52 = vpop.xlane.xlu0 %392 }
 0x15f   :  { %v394_v57 = vrot.slane %v393_v52, 4 }
 0x161   :  { %v395_v44 = vadd.f32 %v394_v57, %v393_v52 }
 0x162   :  { %v410_v47 = vpop.xlane.xlu0 %409 }
 0x163   :  { %v396_v48 = vrot.slane %v395_v44, 2  ;;  %v411_v49 = vrot.slane %v410_v47, 4 }
 0x165   :  { %v412_v50 = vadd.f32 %v411_v49, %v410_v47  ;;  %v397_v51 = vadd.f32 %v396_v48, %v395_v44 }
 0x167   :  { %v413_v54 = vrot.slane %v412_v50, 2  ;;  %v398_v34 = vrot.slane %v397_v51, 1 }
 0x169   :  { %v414_v58 = vadd.f32 %v413_v54, %v412_v50  ;;  %v399_v59 = vadd.f32 %v398_v34, %v397_v51 }
 0x16b   :  { %461 = vpush %v399_v59  ;;  %v415_v20 = vrot.slane %v414_v58, 1 }
 0x16d   :  { %v416_v55 = vadd.f32 %v415_v20, %v414_v58 }
 0x16f   :  { %463 = vpush %v416_v55 }
 0x19c   :  { %s462_s24 = spop %461 }
 0x19d   :  { %402 = sst [smem:[#allocation9]] %s462_s24 }
 0x1a0   :  { %s464_s25 = spop %463 }
 0x1a1   :  { %419 = sst [smem:[#allocation9 + $0x1]] %s464_s25 }
 0x1bf   :  { %v427_v41 = vpop.xlane.xlu1 %426 }
 0x1c0   :  { %v428_v42 = vrot.slane %v427_v41, 4 }
 0x1c2   :  { %v429_v43 = vadd.f32 %v428_v42, %v427_v41 }
 0x1c4   :  { %v430_v46 = vrot.slane %v429_v43, 2 }
 0x1c6   :  { %v431_v53 = vadd.f32 %v430_v46, %v429_v43 }
 0x1c8   :  { %v432_v15 = vrot.slane %v431_v53, 1 }
 0x1ca   :  { %v433_v56 = vadd.f32 %v432_v15, %v431_v53 }
 0x1cc   :  { %465 = vpush %v433_v56 }
 0x1fd   :  { %s466_s26 = spop %465 }
 0x1fe   :  { %436 = sst [smem:[#allocation9 + $0x2]] %s466_s26 }
 0x1ff   :  { %513 = shalt.err (!%p510_p11)
}
 0x200   :  { %s532_s5 = smov [#allocation9]  }
 0x201   :  { %444 = dma.smem_to_hbm %s532_s5, 16, %s807_s1, [#allocation8]  }
 0x202   :  { %520 = dma.done.wait [#allocation8], 16  }
 0x203   :  { %521 = vsyncadd [#allocation8], 4294967280 }
 0x204   :  { %448 = sfence }
 0x205   :  { %449 = vsyncpa [#allocation7], 1 }
 0x206   :  { %450 = vsyncpa [#allocation8], 1 }

</bundles_post_ra>
